<compile_context>
chip_gen: v5e
topology: v5e:2x2
jax: 0.10.0
libtpu: 0.0.40
codegen_flags: <defaults>
</compile_context>

<pallas_src>
import functools

import jax
import jax.numpy as jnp
from jax.experimental import pallas as pl
from jax.experimental.pallas import tpu as pltpu


def _sigmoid(z):
    # EUP-friendly sigmoid: 0.5 * (tanh(z/2) + 1) == 1 / (1 + exp(-z)).
    return 0.5 * (jnp.tanh(z * 0.5) + 1.0)


def _mean_attention_single_kernel(x_ref, o_ref, *, c_total):
    # x_ref: (NB, C, HWB) — all channels in one block.  o_ref: (NB, HWB).
    nb, c, hwb = x_ref.shape
    x = x_ref[...].astype(jnp.float32)
    if c % 8 == 0 and c > 8:
        # Deferred sublane reduce: VALU adds across vregs, one 8-sublane XLU
        # reduce at the end instead of one per vreg column.
        s = x.reshape(nb, c // 8, 8, hwb).sum(axis=1).sum(axis=1)
    else:
        s = x.sum(axis=1)
    o_ref[...] = _sigmoid(s * (1.0 / c_total)).astype(o_ref.dtype)


def _mean_attention_multi_kernel(x_ref, o_ref, acc_ref, *,
                                 c_total, c_tile, mask_last):
    # x_ref: (NB, CK, HWB) with CK % 8 == 0.  o_ref: (NB, HWB).
    # acc_ref: (NB, 8, HWB) f32 per-sublane-phase partial sums.
    k = pl.program_id(2)
    last = pl.num_programs(2) - 1
    nb, ck, hwb = x_ref.shape

    @pl.when(k == 0)
    def _():
        acc_ref[...] = jnp.zeros_like(acc_ref)

    # Fold the channel tile into (vreg-groups, 8 sublanes); summing over the
    # group axis is pure VALU work (stays hidden under the HBM stream).
    x = x_ref[...].astype(jnp.float32).reshape(nb, ck // 8, 8, hwb)

    if mask_last:
        @pl.when(k != last)
        def _():
            acc_ref[...] += x.sum(axis=1)

        @pl.when(k == last)
        def _():
            ch = (k * c_tile
                  + jax.lax.broadcasted_iota(jnp.int32, x.shape, 1) * 8
                  + jax.lax.broadcasted_iota(jnp.int32, x.shape, 2))
            acc_ref[...] += jnp.where(ch < c_total, x, 0.0).sum(axis=1)
    else:
        acc_ref[...] += x.sum(axis=1)

    @pl.when(k == last)
    def _():
        s = acc_ref[...].sum(axis=1)      # one-time 8-sublane XLU reduce
        o_ref[...] = _sigmoid(s * (1.0 / c_total)).astype(o_ref.dtype)


def _vmem_budgets():
    """(per-input-block budget, scoped-vmem-limit cap), per TPU generation."""
    try:
        cap = getattr(pltpu.get_tpu_info(), "vmem_capacity_bytes", 64 << 20)
    except Exception:
        cap = 64 << 20                       # conservative (v7x-sized) default
    if cap >= (100 << 20):                   # v5e / v6e: 128 MiB VMEM
        return 16 << 20, 96 << 20
    return 10 << 20, 48 << 20                # v7x: 64 MiB VMEM


def _choose_tiles(N, C, HW, itemsize, budget):
    """Pick (NB, CK, HWB).

    Legality: CK multiple of 8 or == C; HWB multiple of 128 or == HW; NB == N
    (when N <= base) or a multiple of 8.  CK < C implies CK % 8 == 0, as
    required by the deferred-reduce accumulator kernel.
    """
    base_nb = 16 if itemsize <= 2 else 8     # pack bf16/fp16 output sublanes
    NB = N if N <= base_nb else base_nb

    def nbytes(nb, ck, hwb):
        return nb * ck * hwb * itemsize

    if nbytes(NB, C, HW) <= budget:
        return NB, C, HW

    # Shrink the channel tile first (keeps the output block lane-dense & big).
    ck = (budget // (NB * HW * itemsize) // 8) * 8
    if ck >= 8:
        return NB, min(ck, C), HW

    # Channel tile is at its floor; tile the spatial (lane) axis instead of
    # overshooting the budget (v7x robustness).
    CK = 8 if C >= 8 else C
    hwb = (budget // (NB * CK * itemsize) // 128) * 128
    HWB = min(max(hwb, 128), HW)
    return NB, CK, HWB


def mean_attention(x, *, _tiles=None):
    """x: (N, C, H, W) -> (N, 1, H, W), sigmoid of the channel mean."""
    N, C, H, W = x.shape
    HW = H * W
    itemsize = x.dtype.itemsize
    x_flat = x.reshape(N, C, HW)

    budget, vmem_cap = _vmem_budgets()
    NB, CK, HWB = _tiles if _tiles is not None else _choose_tiles(
        N, C, HW, itemsize, budget)

    # v7x has two TensorCores: make sure the parallel grid has >= 2 steps when
    # that is cheap (split the lane axis; ~0.35us extra pipeline overhead is
    # irrelevant for an HBM-bound kernel, and harmless on 1-TC v5e/v6e).
    if _tiles is None and pl.cdiv(N, NB) * pl.cdiv(HW, HWB) == 1 and HW >= 256:
        HWB = max(128, (HW // 2 // 128) * 128)

    grid_n, grid_hw, grid_c = pl.cdiv(N, NB), pl.cdiv(HW, HWB), pl.cdiv(C, CK)
    multi = grid_c > 1

    in_block = NB * CK * HWB * itemsize
    out_block = NB * HWB * itemsize
    acc_bytes = NB * 8 * HWB * 4 if multi else 0

    # Extra pipeline depth only pays off for many tiny reduce blocks.
    buffered = (pl.Buffered(3)
                if (multi and grid_c >= 4 and in_block <= (1 << 20)) else None)
    n_in_bufs = 3 if buffered is not None else 2

    vmem_limit = int(min(max(n_in_bufs * in_block + 2 * out_block + acc_bytes
                             + (4 << 20), 16 << 20), vmem_cap))

    if multi:
        kernel = functools.partial(_mean_attention_multi_kernel, c_total=C,
                                   c_tile=CK, mask_last=(C % CK != 0))
        grid = (grid_n, grid_hw, grid_c)
        spec_kwargs = {} if buffered is None else {"pipeline_mode": buffered}
        in_specs = [pl.BlockSpec((NB, CK, HWB), lambda i, j, k: (i, k, j),
                                 **spec_kwargs)]
        out_specs = pl.BlockSpec((NB, HWB), lambda i, j, k: (i, j))
        scratch_shapes = [pltpu.VMEM((NB, 8, HWB), jnp.float32)]
        dim_sem = ("parallel", "parallel", "arbitrary")
    else:
        kernel = functools.partial(_mean_attention_single_kernel, c_total=C)
        grid = (grid_n, grid_hw)
        in_specs = [pl.BlockSpec((NB, C, HWB), lambda i, j: (i, 0, j))]
        out_specs = pl.BlockSpec((NB, HWB), lambda i, j: (i, j))
        scratch_shapes = []
        dim_sem = ("parallel", "parallel")

    out_flat = pl.pallas_call(
        kernel,
        out_shape=jax.ShapeDtypeStruct((N, HW), x.dtype),
        grid_spec=pltpu.PrefetchScalarGridSpec(
            num_scalar_prefetch=0,
            grid=grid,
            in_specs=in_specs,
            out_specs=out_specs,
            scratch_shapes=scratch_shapes,
        ),
        compiler_params=pltpu.CompilerParams(
            dimension_semantics=dim_sem,
            vmem_limit_bytes=vmem_limit,
        ),
        cost_estimate=pl.CostEstimate(
            flops=N * C * HW + 2 * N * HW,
            transcendentals=N * HW,
            bytes_accessed=N * C * HW * itemsize + N * HW * itemsize,
        ),
    )(x_flat)

    return out_flat.reshape(N, 1, H, W)


if __name__ == "__main__":
    root = jax.random.PRNGKey(0)
    k0, k1, k2, k3 = jax.random.split(root, 4)

    def ref(x):
        return jax.nn.sigmoid(jnp.mean(x, axis=1, keepdims=True)).astype(x.dtype)

    # 1) primary shape from the module spec.
    x = jax.random.normal(k0, (2, 4, 16, 16), dtype=jnp.float32)
    out = mean_attention(x)
    jax.block_until_ready(out)
    assert out.shape == (2, 1, 16, 16), out.shape
    assert jnp.allclose(out, ref(x), atol=2e-6, rtol=1e-6), "mismatch (base)"

    # 2) ragged batch: N not a multiple of the batch tile (padded-row writeback).
    x_r = jax.random.normal(k1, (10, 4, 16, 16), dtype=jnp.float32)
    out_r = mean_attention(x_r)
    jax.block_until_ready(out_r)
    assert jnp.allclose(out_r, ref(x_r), atol=2e-6, rtol=1e-6), "mismatch (ragged N)"

    # 3) deferred-reduce single-block path (C multiple of 8).
    x_d = jax.random.normal(k2, (2, 16, 16, 16), dtype=jnp.float32)
    out_d = mean_attention(x_d)
    jax.block_until_ready(out_d)
    assert jnp.allclose(out_d, ref(x_d), atol=2e-6, rtol=1e-6), "mismatch (C=16)"

    # 4) multi-block channel reduction with a partial last channel block
    #    (forced small tiles so the accumulator + mask path is exercised).
    x_c = jax.random.normal(k3, (2, 20, 16, 16), dtype=jnp.float32)
    out_c = mean_attention(x_c, _tiles=(2, 8, 256))
    jax.block_until_ready(out_c)
    assert jnp.allclose(out_c, ref(x_c), atol=2e-6, rtol=1e-6), "mismatch (multi-C)"

    print("KERNEL_OK")
</pallas_src>

<mosaic_0001>
module attributes {stable_mosaic.version = 11 : i64} {
  func.func @_mean_attention_single_kernel(%arg0: i32, %arg1: i32, %arg2: memref<2x4x128xf32, #tpu.memory_space<vmem>>, %arg3: memref<2x128xf32, #tpu.memory_space<vmem>>) attributes {dimension_semantics = [#tpu.dimension_semantics<parallel>, #tpu.dimension_semantics<parallel>], iteration_bounds = array<i64: 1, 2>, scalar_prefetch = 0 : i64, scratch_operands = 0 : i64, tpu.core_type = #tpu.core_type<tc>, window_params = [{transform_indices = @transform_0, window_bounds = array<i64: 2, 4, 128>}, {transform_indices = @transform_1, window_bounds = array<i64: 2, 128>}]} {
    %c0 = arith.constant 0 : index
    %c0_0 = arith.constant 0 : index
    %c0_1 = arith.constant 0 : index
    %0 = vector.load %arg2[%c0, %c0_0, %c0_1] : memref<2x4x128xf32, #tpu.memory_space<vmem>>, vector<2x4x128xf32>
    %cst = arith.constant dense<0.000000e+00> : vector<2x128xf32>
    %1 = vector.multi_reduction <add>, %0, %cst [1] : vector<2x4x128xf32> to vector<2x128xf32>
    %cst_2 = arith.constant 2.500000e-01 : f32
    %2 = vector.broadcast %cst_2 : f32 to vector<2x128xf32>
    %3 = arith.mulf %1, %2 : vector<2x128xf32>
    %cst_3 = arith.constant 5.000000e-01 : f32
    %4 = vector.broadcast %cst_3 : f32 to vector<2x128xf32>
    %5 = arith.mulf %3, %4 : vector<2x128xf32>
    %6 = math.tanh %5 : vector<2x128xf32>
    %cst_4 = arith.constant 1.000000e+00 : f32
    %7 = vector.broadcast %cst_4 : f32 to vector<2x128xf32>
    %8 = arith.addf %6, %7 : vector<2x128xf32>
    %cst_5 = arith.constant 5.000000e-01 : f32
    %9 = vector.broadcast %cst_5 : f32 to vector<2x128xf32>
    %10 = arith.mulf %9, %8 : vector<2x128xf32>
    %c0_6 = arith.constant 0 : index
    %c0_7 = arith.constant 0 : index
    %11 = vector.load %arg3[%c0_6, %c0_7] : memref<2x128xf32, #tpu.memory_space<vmem>>, vector<2x128xf32>
    tpu.vector_store %arg3[%c0_6, %c0_7], %10 {strides = array<i32>} : memref<2x128xf32, #tpu.memory_space<vmem>>, vector<2x128xf32>,
    return
  }
  func.func @transform_0(%arg0: i32, %arg1: i32) -> (i32, i32, i32) {
    %c0_i32 = arith.constant 0 : i32
    %c0_i32_0 = arith.constant 0 : i32
    return %arg0, %c0_i32, %arg1 : i32, i32, i32
  }
  func.func @transform_1(%arg0: i32, %arg1: i32) -> (i32, i32) {
    %c0_i32 = arith.constant 0 : i32
    return %arg0, %arg1 : i32, i32
  }
}

</mosaic_0001>

<bundles_post_ra>
// kernel: tpu_custom_call.1
= control target key start
LH: loop header
LB: loop body
LE: loop exit
PB: predicated region body
PF: predicated region fallthrough
CT: control target
= control target key end

     0   :  { %6 = vsyncpa [#allocation3], 0  ;;  %s619_s0 = inlined_call_operand.hbm [shape: f32[2,4,256], index: 0, kind: input, shape index: {}]   ;;  %s620_s1 = inlined_call_operand.hbm [shape: f32[2,256], index: 1, kind: output, shape index: {}]  }
   0x1   :  { %8 = vsyncpa [#allocation3 + $0x1], 0 }
   0x2   :  { %9 = vsyncpa [#allocation4], 0 }
   0x3   :  { %11 = vsyncpa [#allocation4 + $0x1], 0  ;;  %s498_s6 = smov 0   ;;  %s500_s7 = smov 0  }
   0x4   :  { %s502_s8 = smov 0   ;;  %s504_s9 = smov 0  }
   0x5   :  { %s506_s10 = smov 0   ;;  %s508_s11 = smov 0  }
   0x6 LB: > { %s289_s12 = sadd.s32 4294967295, %s483_s11   ;;  %s290_s13 = sadd.s32 4294967294, %s483_s11   ;;  %s483_s11 = sphi %s508_s11, %s17_s11   ;;  %s479_s10 = sphi %s506_s10, %s629_s10   ;;  %s475_s9 = sphi %s504_s9, %s628_s9   ;;  %s471_s8 = sphi %s502_s8, %s627_s8   ;;  %s467_s7 = sphi %s500_s7, %s626_s7   ;;  %s463_s6 = sphi %s498_s6, %s625_s6  }
   0x7   : > { %s26_s14 = sadd.s32 1, %s479_s10  ;;  %s38_s15 = sadd.s32 1, %s471_s8 }
   0x8   : > { %p27_p0 = scmp.ge.s32.totalorder %s26_s14, 2  ;;  %p45_p1 = scmp.ne.s32.totalorder %s471_s8, %s467_s7 }
   0x9   : > { %p46_p2 = scmp.eq.s32.totalorder %s483_s11, 0  ;;  %p51_p3 = scmp.ne.s32.totalorder %s467_s7, %s463_s6 }
   0xa   : > { %s631_s14 = smov (%p27_p0, %s26_s14), 0  ;;  %p52_p5 = scmp.eq.s32.totalorder %s289_s12, 0 }
   0xb   : > { %p539_p4 = por %p46_p2, %p45_p1  ;;  %s34_s17 = ssub.s32 %s479_s10, %s631_s14 }
   0xc   : > { %p77_p6 = scmp.eq.s32.totalorder %s289_s12, 1  ;;  %p36_p7 = scmp.eq.s32.totalorder %s34_s17, 0 }
   0xd   : > { %p545_p8 = por %p52_p5, %p51_p3  ;;  %p83_p10 = scmp.eq.s32.totalorder %s290_s13, 1 }
   0xe   : > { %p549_p9 = por %p77_p6, %p45_p1  ;;  %p292_p12 = scmp.ge.s32.totalorder %s483_s11, 2 }
   0xf   : > { %s554_s20 = scalar_select %p36_p7, %s471_s8, %s38_s15  }
  0x10   : > { %p556_p11 = por %p83_p10, %p51_p3  ;;  %p314_p13 = scmp.lt.s32.totalorder %s483_s11, 2 }
  0x11   : > { %s103_s22 = sand.u32 1, %s471_s8   ;;  %s294_s24 = sshll.u32 %s479_s10, 2 }
  0x12   : > { %s293_s23 = sshll.u32 %s103_s22, 3  ;;  %s114_s27 = scalar_lea.hbm %s619_s0, %s294_s24 }
  0x13   : > { %s107_s28 = scalar_lea.vmem [#allocation2], %s293_s23  ;;  %s115_s30 = sshll.u32 %s114_s27, 4  ;;  %s116_s30 = int_to_ptr.hbm [resolvable:$true] %s115_s30 }
  0x14   : > { %s117_s29 = sshll.u32 %s107_s28, 4  ;;  %p307_p0 = pnand %p314_p13, %p539_p4  ;;  %s118_s29 = int_to_ptr.vmem [resolvable:$true] %s117_s29 }
  0x15   : > { %s104_s2 = scalar_lea.sflag [#allocation3], %s103_s22  ;;  %s485_s3 = smov 128  }
  0x16   : > { %s486_s4 = smov 64   ;;  %s487_s5 = smov 4  }
  0x17   : > { %309 = dma.hbm_to_vmem [thread:$0]  (!%p307_p0), %s116_s30, 128, %s118_s29, %s104_s2, %s485_s3, %s486_s4, %s487_s5  }
  0x18   : > { %p295_p1 = scmp.ge.s32.totalorder %s483_s11, 1  ;;  %p125_p2 = scmp.lt.s32.totalorder %s483_s11, 3 }
  0x1a   : > { %p126_p3 = pnand %p295_p1, %p125_p2 }
  0x1b   : > { %s572_s12 = sand.u32 (!%p126_p3), 1, %s467_s7  }
  0x1c   : > { %129 = sbr.rel (%p126_p3) target bundleno = 68 (0x44), region = 24  ;;  %s296_s13 = sshll.u32 (!%p126_p3), %s572_s12, 3 }
  0x1d   : > { %s132_s15 = scalar_lea.sflag (!%p126_p3), [#allocation3], %s572_s12  ;;  %s135_s17 = scalar_lea.vmem (!%p126_p3), [#allocation2], %s296_s13 }
  0x21   : > { %454 = dma.done.wait (%p545_p8), %s132_s15, 128  }
  0x22   : > { %456 = vsyncadd (%p545_p8), %s132_s15, 4294967168  ;;  %vm158_vm0 = vcmask 1043456   ;;  %v156_v0 = vld [vmem:[%s135_s17] sm:$0xf]  ;;  %v157_v1 = vld [vmem:[%s135_s17 + $0x4] sm:$0xf] }
  0x23   : > { %v159_v2 = vsel %vm158_vm0, %v156_v0, 0.0  ;;  %v166_v3 = vsel %vm158_vm0, %v157_v1, 0.0  ;;  %s297_s16 = sshll.u32 %s572_s12, 1  ;;  %s299_s18 = sshll.u32 %s475_s9, 1  ;;  %vm185_vm1 = vcmask 1041409  }
  0x24   : > { %v160_v4 = vrot.slane %v159_v2, 4  ;;  %v167_v5 = vrot.slane %v166_v3, 4  ;;  %s202_s24 = scalar_lea.hbm %s620_s1, %s299_s18  ;;  %s154_s25 = scalar_lea.vmem [#allocation5], %s297_s16 }
  0x25   : > { %s204_s26 = sshll.u32 %s154_s25, 4  ;;  %s206_s27 = sshll.u32 %s202_s24, 4  ;;  %s205_s26 = int_to_ptr.vmem [resolvable:$true] %s204_s26  ;;  %s207_s27 = int_to_ptr.hbm [resolvable:$true] %s206_s27 }
  0x26   : > { %v161_v6 = vadd.f32 %v160_v4, %v159_v2  ;;  %v168_v7 = vadd.f32 %v167_v5, %v166_v3  ;;  %s190_s9 = scalar_lea.sflag [#allocation4], %s572_s12  ;;  %s415_s28 = sshra.s32 %s207_s27, 4  ;;  %s416_s28 = int_to_ptr.hbm [resolvable:$true] %s415_s28 }
  0x27   : > { %s417_s29 = scalar_lea.hbm %s416_s28, 2  ;;  %s421_s3 = scalar_lea.hbm %s620_s1, 4 }
  0x28   : > { %v162_v8 = vrot.slane %v161_v6, 2  ;;  %v169_v9 = vrot.slane %v168_v7, 2  ;;  %p418_p4 = scmp.ne.s32.totalorder %s416_s28, %s417_s29  ;;  %p422_p7 = scmp.lt.s32.totalorder %s416_s28, %s620_s1 }
  0x29   : > { %p423_p8 = scmp.lt.s32.totalorder %s421_s3, %s417_s29 }
  0x2a   : > { %v163_v10 = vadd.f32 %v162_v8, %v161_v6  ;;  %v170_v11 = vadd.f32 %v169_v9, %v168_v7  ;;  %p419_p5 = pnand %p418_p4, %p549_p9 }
  0x2b   : > { %p424_p10 = por %p423_p8, %p422_p7 }
  0x2c   : > { %v164_v12 = vrot.slane %v163_v10, 1  ;;  %v171_v13 = vrot.slane %v170_v11, 1  ;;  %p420_p6 = pneg %p419_p5 }
  0x2e   : > { %v165_v14 = vadd.f32 %v164_v12, %v163_v10  ;;  %v172_v15 = vadd.f32 %v171_v13, %v170_v11  ;;  %p425_p13 = pnand %p424_p10, %p420_p6 }
  0x30   : > { %v173_v16 = vmul.f32 0.25, %v165_v14  ;;  %v174_v17 = vmul.f32 0.25, %v172_v15 }
  0x32   : > { %v175_v18 = vmul.f32 0.5, %v173_v16  ;;  %v176_v19 = vmul.f32 0.5, %v174_v17 }
  0x34   : > { %367 = vtanh.f32 %v175_v18 }
  0x35   : > { %369 = vtanh.f32 %v176_v19 }
  0x3a   : > { %v368_v20 = vpop.eup %367 }
  0x3b   : > { %v370_v21 = vpop.eup %369  ;;  %v179_v22 = vadd.f32 1.0, %v368_v20 }
  0x3c   : > { %v180_v23 = vadd.f32 1.0, %v370_v21 }
  0x3d   : > { %v181_v24 = vmul.f32 0.5, %v179_v22 }
  0x3e   : > { %v182_v25 = vmul.f32 0.5, %v180_v23 }
  0x40   : > { %v186_v26 = vsel %vm185_vm1, %v182_v25, %v181_v24 }
  0x41   : > { %188 = vst [vmem:[%s154_s25] sm:$0x3] %v186_v26 }
  0x42   : > { %428 = shalt.err (!%p425_p13)
}
  0x43   : > { %304 = dma.vmem_to_hbm [thread:$0]  (%p549_p9), %s205_s26, 32, %s207_s27, %s190_s9  }
  0x44 PF: > { %s218_s12 = sand.u32 1, %s463_s6   ;;  %p311_p0 = pnand %p292_p12, %p556_p11 }
  0x45   : > { %s219_s13 = scalar_lea.sflag [#allocation4], %s218_s12 }
  0x46   : > { %p312_p1 = pneg %p311_p0 }
  0x48   : > { %458 = dma.done.wait (%p312_p1), %s219_s13, 32  }
  0x49   : > { %460 = vsyncadd (%p312_p1), %s219_s13, 4294967264  ;;  %s17_s11 = sadd.s32 1, %s483_s11   ;;  %s625_s6 = smov %s467_s7 }
  0x4a   : > { %p14_p2 = scmp.ge.s32.totalorder %s17_s11, 4   ;;  %s626_s7 = smov %s471_s8 }
  0x4b   : > { %s627_s8 = smov %s554_s20  ;;  %s628_s9 = smov %s479_s10 }
  0x4c   : > { %s629_s10 = smov %s631_s14  ;;  %16 = sbr.rel (!%p14_p2) target bundleno = 6 (0x6), region = 69 }
  0x51   :  { %225 = vsyncpa [#allocation3], 1 }
  0x52   :  { %227 = vsyncpa [#allocation3 + $0x1], 1 }
  0x53   :  { %228 = vsyncpa [#allocation4], 1 }
  0x54   :  { %230 = vsyncpa [#allocation4 + $0x1], 1 }

</bundles_post_ra>
